<compile_context>
chip_gen: v7x
topology: tpu7x:2x2x1
jax: 0.10.0
libtpu: 0.0.40
codegen_flags: <defaults>
</compile_context>

<pallas_src>
import jax
import jax.numpy as jnp
from jax.experimental import pallas as pl
from jax.experimental.pallas import tpu as pltpu


# ---------------------------------------------------------------------------
# Hardware-aware budgets
# ---------------------------------------------------------------------------
def _vmem_capacity_bytes():
    try:
        return int(pltpu.get_tpu_info().vmem_capacity_bytes)
    except Exception:
        return 64 << 20  # conservative fallback (v7x per-TensorCore VMEM)


_VMEM_CAP = _vmem_capacity_bytes()
# Scoped VMEM limit requested from Mosaic (leave headroom for compiler scratch).
_VMEM_LIMIT = int(_VMEM_CAP * 3 // 4)
# Budget used when sizing our own (double-buffered) tiles.
_TILE_BUDGET = int(_VMEM_CAP // 2)

if _VMEM_CAP >= (96 << 20):          # v5e / v6e: 128 MiB physical VMEM
    _TV_TARGET, _TT_TARGET, _TU_TARGET = 2048, 32, 64
else:                                # v7x: 64 MiB physical VMEM
    _TV_TARGET, _TT_TARGET, _TU_TARGET = 1024, 32, 64

# Width of the per-step output-projection sub-dot (caps the f32 logits temp).
_LOGITS_CHUNK = 512


def _round_up(n, m):
    return ((n + m - 1) // m) * m


def _choose_tile(n, target, align):
    """Aligned tile size <= target, limiting padding waste to ~12.5% of n."""
    n_al = _round_up(n, align)
    if n_al <= target:
        return n_al
    t = target
    while t > align and (_round_up(n, t) - n) * 8 > n:
        t = max(align, t // 2)
    return t


def _joint_tiles(T, U, D, V, out_itemsize, compute_itemsize):
    # tU is the sublane dim of the output block: keep it a multiple of 16 so
    # bf16 output stores are dense (2 rows / sublane). tV multiple of 128.
    tT = _choose_tile(T, _TT_TARGET, 8)
    tU = _choose_tile(U, _TU_TARGET, 16)
    tV = _choose_tile(V, _TV_TARGET, 128)

    def vmem_bytes(tt, tu, tv):
        rows = tt * tu
        dbuf = 2 * (rows * tv * out_itemsize        # out tile
                    + tt * D * 4 + tu * D * 4       # enc/pred tiles (f32)
                    + D * tv * compute_itemsize     # ffn_out weight tile
                    + tv * 4)                       # bias tile
        scratch = rows * D * compute_itemsize       # cached tanh(enc+pred)
        temps = (rows * D * 4 * 2                   # f32 broadcast-add + tanh
                 + rows * min(tv, _LOGITS_CHUNK) * 4)   # f32 logits sub-block
        return dbuf + scratch + temps

    while vmem_bytes(tT, tU, tV) > _TILE_BUDGET:
        if tV > 128:
            tV = max(128, _round_up(tV // 2, 128))
        elif tU > 16:
            tU = max(16, _round_up(tU // 2, 16))
        elif tT > 8:
            tT = max(8, _round_up(tT // 2, 8))
        else:
            break
    return tT, tU, tV


# ---------------------------------------------------------------------------
# Pallas kernels
# ---------------------------------------------------------------------------
def linear_kernel(x_ref, w_ref, b_ref, o_ref):
    # x_ref: (1, tN, F), w_ref: (F, D) in compute dtype, b_ref: (1, D) f32
    x = x_ref[0].astype(w_ref.dtype)                        # (tN, F)
    y = jnp.dot(x, w_ref[...], preferred_element_type=jnp.float32)
    o_ref[0] = (y + b_ref[...]).astype(o_ref.dtype)


def joint_kernel(enc_ref, pred_ref, w_ref, b_ref, o_ref, z_ref):
    # enc_ref : (1, tT, D)   projected encoder tile (f32)
    # pred_ref: (1, tU, D)   projected predictor tile (f32)
    # w_ref   : (D, tV)      ffn_out weight tile ([in, out], compute dtype)
    # b_ref   : (1, tV)      ffn_out bias tile (f32)
    # o_ref   : (1, tT, tU, tV)
    # z_ref   : (tT*tU, D)   VMEM scratch: tanh(enc+pred) cached across V tiles
    tT, tU, tV = o_ref.shape[1], o_ref.shape[2], o_ref.shape[3]

    # V is the innermost ("arbitrary") grid axis: compute the activated joint
    # input once per (b, T-tile, U-tile) and reuse it for every V tile.
    @pl.when(pl.program_id(3) == 0)
    def _():
        enc = enc_ref[0]                                    # (tT, D) f32
        pred = pred_ref[0]                                  # (tU, D) f32
        # joint_mode == 'add': broadcast add in f32, tanh on the EUP.
        # TODO(synk): on v6e/v7x a bf16 tanh (cast before the EUP) would halve
        # this phase; kept in f32 for portability/precision.
        z = jnp.tanh(enc[:, None, :] + pred[None, :, :])    # (tT, tU, D)
        z_ref[...] = z.reshape(z_ref.shape).astype(z_ref.dtype)

    z2 = z_ref[...]                                         # (tT*tU, D)

    # Split the output projection along V so the f32 logits temporary stays
    # small; add bias and store each sub-block immediately (lane-dense vst).
    chunk = min(tV, _LOGITS_CHUNK)
    for c in range(0, tV, chunk):
        cw = min(chunk, tV - c)
        logits = jnp.dot(z2, w_ref[:, c:c + cw],
                         preferred_element_type=jnp.float32)
        logits = logits + b_ref[:, c:c + cw]
        o_ref[0, :, :, c:c + cw] = (
            logits.reshape(tT, tU, cw).astype(o_ref.dtype))


# ---------------------------------------------------------------------------
# Wrappers
# ---------------------------------------------------------------------------
def pallas_linear(x, w, b, *, compute_dtype=jnp.bfloat16, tn_target=256,
                  out_dtype=None):
    """x: [B, N, F], w: [F, D], b: [D] -> [B, N, D]."""
    B, N, F = x.shape
    D = w.shape[1]
    out_dtype = out_dtype or x.dtype

    tN = _choose_tile(N, tn_target, 8)
    N_pad = _round_up(N, tN)
    if N_pad != N:
        x = jnp.pad(x, ((0, 0), (0, N_pad - N), (0, 0)))

    w_c = w.astype(compute_dtype)
    b_c = b.reshape(1, D).astype(jnp.float32)

    cost = pl.CostEstimate(
        flops=int(2 * B * N_pad * F * D),
        transcendentals=0,
        bytes_accessed=int(x.size * x.dtype.itemsize
                           + w_c.size * w_c.dtype.itemsize
                           + B * N_pad * D * jnp.dtype(out_dtype).itemsize))

    out = pl.pallas_call(
        linear_kernel,
        out_shape=jax.ShapeDtypeStruct((B, N_pad, D), out_dtype),
        grid_spec=pltpu.PrefetchScalarGridSpec(
            num_scalar_prefetch=0,
            grid=(B, N_pad // tN),
            in_specs=[
                pl.BlockSpec((1, tN, F), lambda bi, ni: (bi, ni, 0)),
                pl.BlockSpec((F, D), lambda bi, ni: (0, 0)),
                pl.BlockSpec((1, D), lambda bi, ni: (0, 0)),
            ],
            out_specs=pl.BlockSpec((1, tN, D), lambda bi, ni: (bi, ni, 0)),
        ),
        compiler_params=pltpu.CompilerParams(
            dimension_semantics=("parallel", "parallel"),
            vmem_limit_bytes=_VMEM_LIMIT),
        cost_estimate=cost,
    )(x, w_c, b_c)

    if N_pad != N:
        out = out[:, :N, :]
    return out


def pallas_joint(enc_proj, pred_proj, w_out, b_out, *,
                 compute_dtype=jnp.bfloat16, out_dtype=jnp.bfloat16):
    """enc_proj: [B, T, D], pred_proj: [B, U, D] -> [B, T, U, V]."""
    B, T, D = enc_proj.shape
    B2, U, D2 = pred_proj.shape
    if B != B2 or D != D2 or D != w_out.shape[0]:
        raise ValueError(
            f"shape mismatch: enc {enc_proj.shape}, pred {pred_proj.shape}, "
            f"w_out {w_out.shape}")
    V = w_out.shape[1]
    out_itemsize = jnp.dtype(out_dtype).itemsize
    compute_itemsize = jnp.dtype(compute_dtype).itemsize

    tT, tU, tV = _joint_tiles(T, U, D, V, out_itemsize, compute_itemsize)
    T_pad = _round_up(T, tT)
    U_pad = _round_up(U, tU)
    V_pad = _round_up(V, tV)

    # v7x has 2 TensorCores: make sure the "parallel" grid axes have >= 2
    # total extent so both cores get work (the V axis must stay sequential).
    if B * (T_pad // tT) * (U_pad // tU) < 2:
        if T_pad // 8 >= 2:
            tT = 8
        elif U_pad // 16 >= 2:
            tU = 16

    # Pad to tile multiples: lane-dense unmasked output stores, layout-
    # preserving in-kernel reshapes; pad sliced off below.
    if T_pad != T:
        enc_proj = jnp.pad(enc_proj, ((0, 0), (0, T_pad - T), (0, 0)))
    if U_pad != U:
        pred_proj = jnp.pad(pred_proj, ((0, 0), (0, U_pad - U), (0, 0)))
    w_c = w_out.astype(compute_dtype)
    b_c = b_out.reshape(1, V).astype(jnp.float32)
    if V_pad != V:
        w_c = jnp.pad(w_c, ((0, 0), (0, V_pad - V)))
        b_c = jnp.pad(b_c, ((0, 0), (0, V_pad - V)))

    # V-tile axis innermost so the cached tanh(enc+pred) scratch is reused
    # for every V tile of a given (B, T-tile, U-tile).
    grid = (B, T_pad // tT, U_pad // tU, V_pad // tV)

    cost = pl.CostEstimate(
        flops=int(2 * B * T_pad * U_pad * D * V_pad + B * T_pad * U_pad * D),
        transcendentals=int(B * T_pad * U_pad * D),
        bytes_accessed=int(
            B * T_pad * U_pad * V_pad * out_itemsize                 # writeback
            + B * (T_pad // tT) * (U_pad // tU) * D * V_pad * compute_itemsize
            + enc_proj.size * enc_proj.dtype.itemsize
            + pred_proj.size * pred_proj.dtype.itemsize))

    out = pl.pallas_call(
        joint_kernel,
        out_shape=jax.ShapeDtypeStruct((B, T_pad, U_pad, V_pad), out_dtype),
        grid_spec=pltpu.PrefetchScalarGridSpec(
            num_scalar_prefetch=0,
            grid=grid,
            in_specs=[
                pl.BlockSpec((1, tT, D), lambda b, ti, uj, vj: (b, ti, 0)),
                pl.BlockSpec((1, tU, D), lambda b, ti, uj, vj: (b, uj, 0)),
                pl.BlockSpec((D, tV), lambda b, ti, uj, vj: (0, vj)),
                pl.BlockSpec((1, tV), lambda b, ti, uj, vj: (0, vj)),
            ],
            out_specs=pl.BlockSpec((1, tT, tU, tV),
                                   lambda b, ti, uj, vj: (b, ti, uj, vj)),
            scratch_shapes=[pltpu.VMEM((tT * tU, D), compute_dtype)],
        ),
        compiler_params=pltpu.CompilerParams(
            dimension_semantics=("parallel", "parallel", "parallel",
                                 "arbitrary"),
            vmem_limit_bytes=_VMEM_LIMIT),
        cost_estimate=cost,
    )(enc_proj, pred_proj, w_c, b_c)

    if (T_pad, U_pad, V_pad) != (T, U, V):
        out = out[:, :T, :U, :V]
    return out


class TransducerJointPallas:
    """JAX/Pallas port of wenet TransducerJoint (default config)."""

    def __init__(self, vocab_size, enc_output_size, pred_output_size,
                 join_dim, key):
        self.vocab_size = vocab_size
        self.join_dim = join_dim
        k1, k2, k3, k4, k5, k6 = jax.random.split(key, 6)
        s_enc = 1.0 / jnp.sqrt(enc_output_size)
        s_pred = 1.0 / jnp.sqrt(pred_output_size)
        s_out = 1.0 / jnp.sqrt(join_dim)
        # Weights stored already transposed to [in, out] for the kernels.
        self.w_enc = jax.random.uniform(k1, (enc_output_size, join_dim),
                                        jnp.float32, -s_enc, s_enc)
        self.b_enc = jax.random.uniform(k2, (join_dim,), jnp.float32,
                                        -s_enc, s_enc)
        self.w_pred = jax.random.uniform(k3, (pred_output_size, join_dim),
                                         jnp.float32, -s_pred, s_pred)
        self.b_pred = jax.random.uniform(k4, (join_dim,), jnp.float32,
                                         -s_pred, s_pred)
        self.w_out = jax.random.uniform(k5, (join_dim, vocab_size),
                                        jnp.float32, -s_out, s_out)
        self.b_out = jax.random.uniform(k6, (vocab_size,), jnp.float32,
                                        -s_out, s_out)
        # TODO(synk): hat_joint / postjoin_linear branches not implemented
        # (default config uses neither).

    def __call__(self, enc_out, pred_out, pre_project=True,
                 compute_dtype=jnp.bfloat16, out_dtype=jnp.bfloat16):
        if pre_project:
            enc_out = pallas_linear(enc_out, self.w_enc, self.b_enc,
                                    compute_dtype=compute_dtype)
            pred_out = pallas_linear(pred_out, self.w_pred, self.b_pred,
                                     compute_dtype=compute_dtype)
        if (enc_out.shape[-1] != self.join_dim
                or pred_out.shape[-1] != self.join_dim):
            raise ValueError(
                f"joint expects feature dim {self.join_dim}, got "
                f"enc={enc_out.shape[-1]} pred={pred_out.shape[-1]} "
                f"(did you mean pre_project=True?)")
        return pallas_joint(enc_out, pred_out, self.w_out, self.b_out,
                            compute_dtype=compute_dtype, out_dtype=out_dtype)

    def reference(self, enc_out, pred_out, pre_project=True):
        """Pure-JAX f32 reference of the same forward for verification."""
        if pre_project:
            enc_out = enc_out @ self.w_enc + self.b_enc
            pred_out = pred_out @ self.w_pred + self.b_pred
        z = enc_out[:, :, None, :] + pred_out[:, None, :, :]
        z = jnp.tanh(z)
        return z @ self.w_out + self.b_out


if __name__ == "__main__":
    key = jax.random.PRNGKey(0)
    (k_p1, k_e1, k_d1, k_p2, k_e2, k_d2,
     k_p3, k_e3, k_d3) = jax.random.split(key, 9)

    # ------------------------------------------------------------------
    # Test 1: small shapes, exact f32 path (tight tolerance) + bf16 path.
    # ------------------------------------------------------------------
    B, T, U = 2, 8, 6
    E, P = 32, 48          # enc_output_size, pred_output_size
    D, V = 64, 128         # join_dim, vocab_size

    module = TransducerJointPallas(vocab_size=V, enc_output_size=E,
                                   pred_output_size=P, join_dim=D, key=k_p1)
    enc_out = jax.random.normal(k_e1, (B, T, E), jnp.float32)
    pred_out = jax.random.normal(k_d1, (B, U, P), jnp.float32)

    out_f32 = jax.block_until_ready(
        module(enc_out, pred_out,
               compute_dtype=jnp.float32, out_dtype=jnp.float32))
    ref = module.reference(enc_out, pred_out)
    assert out_f32.shape == (B, T, U, V), out_f32.shape
    assert jnp.allclose(out_f32, ref, atol=1e-4, rtol=1e-4), \
        float(jnp.max(jnp.abs(out_f32 - ref)))

    # Default production path: bf16 MXU + bf16 output, loose tolerance.
    out_bf16 = jax.block_until_ready(module(enc_out, pred_out))
    assert out_bf16.shape == (B, T, U, V), out_bf16.shape
    assert jnp.allclose(out_bf16.astype(jnp.float32), ref,
                        atol=5e-2, rtol=5e-2), \
        float(jnp.max(jnp.abs(out_bf16.astype(jnp.float32) - ref)))

    # ------------------------------------------------------------------
    # Test 2: shapes exercising multiple T tiles (no padding needed).
    # ------------------------------------------------------------------
    B2, T2, U2 = 2, 64, 16
    E2, P2 = 96, 80
    D2, V2 = 128, 256

    module2 = TransducerJointPallas(vocab_size=V2, enc_output_size=E2,
                                    pred_output_size=P2, join_dim=D2, key=k_p2)
    enc_out2 = jax.random.normal(k_e2, (B2, T2, E2), jnp.float32)
    pred_out2 = jax.random.normal(k_d2, (B2, U2, P2), jnp.float32)

    out2 = jax.block_until_ready(module2(enc_out2, pred_out2))
    ref2 = module2.reference(enc_out2, pred_out2)
    assert out2.shape == (B2, T2, U2, V2), out2.shape
    assert jnp.allclose(out2.astype(jnp.float32), ref2, atol=5e-2, rtol=5e-2), \
        float(jnp.max(jnp.abs(out2.astype(jnp.float32) - ref2)))

    # ------------------------------------------------------------------
    # Test 3: non-aligned U and V (padding path) with multiple V tiles, so
    # the tanh cache is reused across V-tile grid steps.
    # ------------------------------------------------------------------
    B3, T3, U3 = 1, 16, 8
    E3, P3 = 24, 40
    D3, V3 = 64, 2100

    module3 = TransducerJointPallas(vocab_size=V3, enc_output_size=E3,
                                    pred_output_size=P3, join_dim=D3, key=k_p3)
    enc_out3 = jax.random.normal(k_e3, (B3, T3, E3), jnp.float32)
    pred_out3 = jax.random.normal(k_d3, (B3, U3, P3), jnp.float32)

    out3 = jax.block_until_ready(module3(enc_out3, pred_out3))
    ref3 = module3.reference(enc_out3, pred_out3)
    assert out3.shape == (B3, T3, U3, V3), out3.shape
    assert jnp.allclose(out3.astype(jnp.float32), ref3, atol=5e-2, rtol=5e-2), \
        float(jnp.max(jnp.abs(out3.astype(jnp.float32) - ref3)))

    print("KERNEL_OK")
</pallas_src>

<mosaic_0001>
module attributes {stable_mosaic.version = 11 : i64} {
  func.func @linear_kernel(%arg0: i32, %arg1: i32, %arg2: memref<1x8x32xf32, #tpu.memory_space<vmem>>, %arg3: memref<32x64xf32, #tpu.memory_space<vmem>>, %arg4: memref<1x64xf32, #tpu.memory_space<vmem>>, %arg5: memref<1x8x64xf32, #tpu.memory_space<vmem>>) attributes {dimension_semantics = [#tpu.dimension_semantics<parallel>, #tpu.dimension_semantics<parallel>], iteration_bounds = array<i64: 2, 1>, scalar_prefetch = 0 : i64, scratch_operands = 0 : i64, tpu.core_type = #tpu.core_type<tc>, window_params = [{transform_indices = @transform_0, window_bounds = array<i64: 1, 8, 32>}, {pipeline_mode = #tpu.pipeline_mode<synchronous>, transform_indices = @transform_1, window_bounds = array<i64: 32, 64>}, {pipeline_mode = #tpu.pipeline_mode<synchronous>, transform_indices = @transform_2, window_bounds = array<i64: 1, 64>}, {transform_indices = @transform_3, window_bounds = array<i64: 1, 8, 64>}]} {
    %c0 = arith.constant 0 : index
    %c0_0 = arith.constant 0 : index
    %c0_1 = arith.constant 0 : index
    %0 = vector.load %arg2[%c0, %c0_0, %c0_1] : memref<1x8x32xf32, #tpu.memory_space<vmem>>, vector<1x8x32xf32>
    %1 = vector.shape_cast %0 : vector<1x8x32xf32> to vector<8x32xf32>
    %c0_2 = arith.constant 0 : index
    %c0_3 = arith.constant 0 : index
    %2 = vector.load %arg3[%c0_2, %c0_3] : memref<32x64xf32, #tpu.memory_space<vmem>>, vector<32x64xf32>
    %cst = arith.constant dense<0.000000e+00> : vector<8x64xf32>
    %3 = tpu.matmul %1, %2, %cst {dimension_numbers = #tpu.dot_dimension_numbers<[1], [0], [0], [1], [0, 0, 1, 1], [], []>} : vector<8x32xf32>, vector<32x64xf32>, vector<8x64xf32> -> vector<8x64xf32>
    %c0_4 = arith.constant 0 : index
    %c0_5 = arith.constant 0 : index
    %4 = vector.load %arg4[%c0_4, %c0_5] : memref<1x64xf32, #tpu.memory_space<vmem>>, vector<1x64xf32>
    %5 = vector.broadcast %4 : vector<1x64xf32> to vector<8x64xf32>
    %6 = arith.addf %3, %5 : vector<8x64xf32>
    %c0_6 = arith.constant 0 : index
    %c0_7 = arith.constant 0 : index
    %c0_8 = arith.constant 0 : index
    %7 = vector.load %arg5[%c0_6, %c0_7, %c0_8] : memref<1x8x64xf32, #tpu.memory_space<vmem>>, vector<1x8x64xf32>
    %8 = vector.shape_cast %7 : vector<1x8x64xf32> to vector<8x64xf32>
    %9 = vector.shape_cast %6 : vector<8x64xf32> to vector<1x8x64xf32>
    tpu.vector_store %arg5[%c0_6, %c0_7, %c0_8], %9 {strides = array<i32>} : memref<1x8x64xf32, #tpu.memory_space<vmem>>, vector<1x8x64xf32>,
    return
  }
  func.func @transform_0(%arg0: i32, %arg1: i32) -> (i32, i32, i32) {
    %c0_i32 = arith.constant 0 : i32
    %c0_i32_0 = arith.constant 0 : i32
    return %arg0, %arg1, %c0_i32 : i32, i32, i32
  }
  func.func @transform_1(%arg0: i32, %arg1: i32) -> (i32, i32) {
    %c0_i32 = arith.constant 0 : i32
    %c0_i32_0 = arith.constant 0 : i32
    %c0_i32_1 = arith.constant 0 : i32
    return %c0_i32, %c0_i32_0 : i32, i32
  }
  func.func @transform_2(%arg0: i32, %arg1: i32) -> (i32, i32) {
    %c0_i32 = arith.constant 0 : i32
    %c0_i32_0 = arith.constant 0 : i32
    %c0_i32_1 = arith.constant 0 : i32
    return %c0_i32, %c0_i32_0 : i32, i32
  }
  func.func @transform_3(%arg0: i32, %arg1: i32) -> (i32, i32, i32) {
    %c0_i32 = arith.constant 0 : i32
    %c0_i32_0 = arith.constant 0 : i32
    return %arg0, %arg1, %c0_i32 : i32, i32, i32
  }
}

</mosaic_0001>

<bundles_post_ra>
// kernel: tpu_custom_call.1
= control target key start
LH: loop header
LB: loop body
LE: loop exit
PB: predicated region body
PF: predicated region fallthrough
CT: control target
= control target key end

     0   :  { %8 = vsyncpa [#allocation3], 0  ;;  %s919_s0 = inlined_call_operand.hbm [shape: f32[2,8,32], index: 0, kind: input, shape index: {}]   ;;  %s920_s1 = inlined_call_operand.hbm [shape: f32[32,64], index: 1, kind: input, shape index: {}]   ;;  %s921_s2 = inlined_call_operand.vmem [shape: f32[1,64], index: 2, kind: input, shape index: {}]   ;;  %s922_s3 = inlined_call_operand.hbm [shape: f32[2,8,64], index: 3, kind: output, shape index: {}]  }
   0x1   :  { %10 = vsyncpa [#allocation3 + $0x1], 0 }
   0x2   :  { %11 = vsyncpa [#allocation6], 0 }
   0x3   :  { %12 = vsyncpa [#allocation4], 0 }
   0x4   :  { %14 = vsyncpa [#allocation4 + $0x1], 0  ;;  %s702_s12 = smov 0   ;;  %s704_s13 = smov 0  }
   0x5   :  { %s706_s14 = smov 0   ;;  %s708_s15 = smov 0  }
   0x6   :  { %s710_s16 = smov 0   ;;  %s712_s17 = smov 0  }
   0x7 LB: > { %s411_s18 = sadd.s32 4294967295, %s672_s17   ;;  %s412_s19 = sadd.s32 4294967294, %s672_s17   ;;  %s672_s17 = sphi %s712_s17, %s20_s17   ;;  %s668_s16 = sphi %s710_s16, %s946_s16   ;;  %s664_s15 = sphi %s708_s15, %s945_s15   ;;  %s660_s14 = sphi %s706_s14, %s944_s14   ;;  %s656_s13 = sphi %s704_s13, %s943_s13   ;;  %s652_s12 = sphi %s702_s12, %s942_s12  }
   0x8   : > { %p54_p0 = scmp.ne.s32.totalorder %s656_s13, %s652_s12  ;;  %p736_p1 = scmp.eq.s32.totalorder %s411_s18, 0 }
   0x9   : > { %p740_p2 = scmp.eq.s32.totalorder %s411_s18, 1  ;;  %p128_p3 = scmp.eq.s32.totalorder %s412_s19, 1 }
   0xa   : > { %s927_s20 = scalar_select %p736_p1, 1, 0 }
   0xb   : > { %s928_s21 = scalar_select %p740_p2, 1, 0 }
   0xc   : > { %p746_p4 = por %p736_p1, %p54_p0  ;;  %p413_p5 = scmp.ge.s32.totalorder %s672_s17, 1 }
   0xd   : > { %p751_p6 = por %p128_p3, %p54_p0  ;;  %p135_p7 = scmp.lt.s32.totalorder %s672_s17, 3 }
   0xe   : > { %s929_s22 = scalar_select %p746_p4, 1, 0 }
   0xf   : > { %s930_s23 = scalar_select %p751_p6, 1, 0 }
  0x10   : > { %p756_p8 = pnand %p413_p5, %p135_p7  ;;  %s674_s25 = smov [#allocation5]  }
  0x11   : > { %s147_s26 = sshll.u32 %s674_s25, 4  ;;  %s32_s28 = sadd.s32 1, %s668_s16  ;;  %s148_s26 = int_to_ptr.vmem [resolvable:$true] %s147_s26 }
  0x12   : > { %s931_s24 = scalar_select %p756_p8, 1, 0 }
  0x13   : > { %p458_p9 = pneg %p756_p8  ;;  %s528_s4 = scalar_lea.hbm %s920_s1, 512 }
  0x14   : > { %p529_p12 = scmp.ne.s32.totalorder %s920_s1, %s528_s4  ;;  %p535_p5 = scmp.lt.u32.totalorder %s528_s4, %s920_s1 }
  0x15   : > { %p765_p11 = pnand %p458_p9, %p736_p1 }
  0x17   : > { %p530_p13 = pneg %p765_p11 }
  0x19   : > { %p531_p0 = pnand %p530_p13, %p529_p12 }
  0x1b   : > { %p532_p3 = pneg %p531_p0 }
  0x1d   : > { %p537_p7 = pnand %p535_p5, %p532_p3 }
  0x1f   : > { %540 = shalt.err (!%p537_p7)
}
  0x20   : > { %s541_s9 = scalar_lea.vmem %s148_s26, 512  ;;  %p549_p1 = scmp.lt.s32.totalorder %s148_s26, %s148_s26 }
  0x21   : > { %p542_p9 = scmp.ne.s32.totalorder %s148_s26, %s541_s9  ;;  %p550_p4 = scmp.lt.s32.totalorder %s541_s9, %s541_s9 }
  0x23   : > { %p544_p10 = pnand %p542_p9, %p530_p13  ;;  %p551_p8 = por %p550_p4, %p549_p1 }
  0x25   : > { %p545_p6 = pneg %p544_p10 }
  0x27   : > { %p552_p2 = pnand %p551_p8, %p545_p6 }
  0x29   : > { %555 = shalt.err (!%p552_p2)
}
  0x2a   : > { %s675_s10 = smov 128   ;;  %s676_s11 = smov 8  }
  0x2b   : > { %461 = dma.hbm_to_vmem [thread:$0]  (!%p765_p11), %s920_s1, 512, %s148_s26, [#allocation6], %s675_s10, %s675_s10, %s676_s11  }
  0x2c   : > { %p34_p1 = scmp.ge.s32.totalorder %s32_s28, 2  ;;  %s41_s25 = sadd.s32 1, %s660_s14 }
  0x2d   : > { %p48_p2 = scmp.ne.s32.totalorder %s660_s14, %s656_s13  ;;  %p49_p4 = scmp.eq.s32.totalorder %s672_s17, 0 }
  0x2e   : > { %s948_s28 = smov (%p34_p1, %s32_s28), 0  ;;  %p934_p8 = scmp.ne.s32.totalorder %s928_s21, 0 }
  0x2f   : > { %p792_p6 = por %p49_p4, %p48_p2  ;;  %s36_s27 = ssub.s32 %s668_s16, %s948_s28 }
  0x30   : > { %p798_p10 = por %p934_p8, %p48_p2  ;;  %p471_p12 = scmp.lt.s32.totalorder %s672_s17, 2 }
  0x31   : > { %p39_p11 = scmp.eq.s32.totalorder %s36_s27, 0  ;;  %s164_s26 = sand.u32 1, %s660_s14  }
  0x32   : > { %s416_s4 = sshll.u32 %s164_s26, 3  ;;  %s417_s6 = sshll.u32 %s668_s16, 7 }
  0x33   : > { %s807_s5 = scalar_select %p39_p11, %s660_s14, %s41_s25  }
  0x34   : > { %s813_s9 = scalar_lea.hbm %s919_s0, %s417_s6  ;;  %s168_s21 = scalar_lea.vmem [#allocation2], %s416_s4 }
  0x35   : > { %s176_s10 = sshll.u32 %s168_s21, 4  ;;  %p819_p13 = pnand %p471_p12, %p792_p6  ;;  %s815_s10 = int_to_ptr.vmem [resolvable:$true] %s176_s10 }
  0x36   : > { %s165_s18 = scalar_lea.sflag [#allocation3], %s164_s26  ;;  %s556_s19 = scalar_lea.hbm %s813_s9, 128 }
  0x37   : > { %p557_p0 = scmp.ne.s32.totalorder %s813_s9, %s556_s19  ;;  %p558_p3 = pneg %p819_p13 }
  0x38   : > { %s561_s4 = scalar_lea.hbm %s919_s0, 256  ;;  %p562_p9 = scmp.lt.u32.totalorder %s813_s9, %s919_s0 }
  0x39   : > { %p559_p5 = pnand %p558_p3, %p557_p0  ;;  %p563_p1 = scmp.lt.u32.totalorder %s561_s4, %s556_s19 }
  0x3a   : > { %p565_p4 = scmp.lt.u32.totalorder %s556_s19, %s813_s9 }
  0x3b   : > { %p560_p7 = pneg %p559_p5  ;;  %p564_p2 = por %p563_p1, %p562_p9 }
  0x3d   : > { %p566_p6 = por %p565_p4, %p564_p2 }
  0x3f   : > { %p567_p8 = pnand %p566_p6, %p560_p7 }
  0x41   : > { %570 = shalt.err (!%p567_p8)
}
  0x42   : > { %s571_s26 = scalar_lea.vmem %s815_s10, 128  ;;  %s677_s7 = smov [#allocation2]  }
  0x43   : > { %p572_p12 = scmp.ne.s32.totalorder %s815_s10, %s571_s26  ;;  %s576_s8 = sshll.u32 %s677_s7, 4  ;;  %s577_s8 = int_to_ptr.vmem [resolvable:$false] %s576_s8 }
  0x44   : > { %s578_s21 = scalar_lea.vmem %s577_s8, 256  ;;  %p579_p5 = scmp.lt.s32.totalorder %s815_s10, %s577_s8 }
  0x45   : > { %p574_p11 = pnand %p572_p12, %p558_p3  ;;  %p580_p9 = scmp.lt.s32.totalorder %s578_s21, %s571_s26 }
  0x47   : > { %p575_p0 = pneg %p574_p11  ;;  %p581_p1 = por %p580_p9, %p579_p5 }
  0x49   : > { %p582_p2 = pnand %p581_p1, %p575_p0 }
  0x4b   : > { %585 = shalt.err (!%p582_p2)
}
  0x4c   : > { %465 = dma.hbm_to_vmem [thread:$0]  (!%p819_p13), %s813_s9, 128, %s815_s10, %s165_s18  }
  0x4d   : > { %p937_p7 = scmp.ne.s32.totalorder %s931_s24, 0 }
  0x4e   : > { %s851_s19 = sand.u32 (!%p937_p7), 1, %s656_s13   ;;  %p938_p3 = scmp.ne.s32.totalorder (!%p937_p7), %s929_s22, 0 }
  0x4f   : > { %185 = sbr.rel (%p937_p7) target bundleno = 329 (0x149), region = 32  ;;  %s419_s25 = sshll.u32 (!%p937_p7), %s851_s19, 3 }
  0x50   : > { %s188_s27 = scalar_lea.sflag (!%p937_p7), [#allocation3], %s851_s19  ;;  %s191_s4 = scalar_lea.vmem (!%p937_p7), [#allocation2], %s419_s25 }
  0x56   : > { %639 = dma.done.wait (%p938_p3), %s188_s27, 128  }
  0x57   : > { %641 = vsyncadd (%p938_p3), %s188_s27, 4294967168  ;;  %p939_p4 = scmp.ne.s32.totalorder %s927_s20, 0 }
  0x59   : > { %643 = dma.done.wait (%p939_p4), [#allocation6], 512  }
  0x5a   : > { %645 = vsyncadd (%p939_p4), [#allocation6], 4294966784  ;;  %v678_v0 = vmov 0.0|0.0   ;;  %vm679_vm0 = vmmov 0   ;;  %v680_v1 = vmov 0.0   ;;  %v219_v2 = vld [vmem:[#allocation5] sm:$0xff] }
  0x5b   : > { %444 = vmatprep.subr.bf16.mxu0 %v678_v0  ;;  %441 = vmatprep.mubr.msk.f32.mxu0 %vm679_vm0, %v680_v1  ;;  %v220_v3 = vld [vmem:[#allocation5 + $0x8] sm:$0xff]  ;;  %v221_v4 = vld [vmem:[#allocation5 + $0x10] sm:$0xff]  ;;  %v222_v6 = vld [vmem:[#allocation5 + $0x18] sm:$0xff]  ;;  %vm230_vm1 = vcmask 261120   ;;  %s425_s24 = sshll.u32 %s664_s15, 7  ;;  %s217_s9 = scalar_lea.vmem [#allocation7], %s419_s25 }
  0x5c   : > { %v445_v5 = vpack.c.bf16 %v220_v3, %v219_v2  ;;  %v448_v7 = vpack.c.bf16 %v222_v6, %v221_v4  ;;  %v218_v8 = vld [vmem:[%s191_s4] sm:$0xff]  ;;  %s321_s10 = sshll.u32 %s217_s9, 4  ;;  %vm304_vm2 = vcmask 523264   ;;  %s870_s29 = scalar_lea.hbm %s922_s3, %s425_s24  ;;  %s872_s10 = int_to_ptr.vmem [resolvable:$true] %s321_s10 }
  0x5d   : > { %v422_v9 = vld [vmem:[%s921_s2] ss:$0 sm:$0xff]  ;;  %s307_s6 = scalar_lea.sflag [#allocation4], %s851_s19  ;;  %s586_s26 = scalar_lea.vmem %s872_s10, 128 }
  0x5e   : > { %446 = vmatpush3.bf16.msra.mxu0 %v445_v5  ;;  %p587_p13 = scmp.ne.s32.totalorder %s872_s10, %s586_s26  ;;  %s681_s15 = smov [#allocation7]  }
  0x5f   : > { %447 = vmatprep.subr.bf16.mxu0 %v678_v0  ;;  %s590_s7 = sshll.u32 %s681_s15, 4  ;;  %s591_s7 = int_to_ptr.vmem [resolvable:$false] %s590_s7 }
  0x60   : > { %p588_p6 = pnand %p587_p13, %p798_p10  ;;  %s592_s8 = scalar_lea.vmem %s591_s7, 256 }
  0x61   : > { %p593_p12 = scmp.lt.s32.totalorder %s872_s10, %s591_s7  ;;  %p594_p11 = scmp.lt.s32.totalorder %s592_s8, %s586_s26 }
  0x62   : > { %449 = vmatpush3.bf16.msra.mxu0 %v448_v7  ;;  %p589_p8 = pneg %p588_p6 }
  0x63   : > { %p595_p0 = por %p594_p11, %p593_p12 }
  0x65   : > { %442 = vmatmul.mubr.msk.f32.vlgmr.msra.gmra.mrb[0].mxu0 %vm230_vm1, %v218_v8  ;;  %p596_p5 = pnand %p595_p0, %p589_p8 }
 0x138   : > { %v300_v10 = vpop.f32.mrb[0].mxu0 }
 0x139   : > { %v301_v11 = vadd.f32 %v422_v9, %v300_v10  ;;  %v443_v12 = vpop.f32.mrb[1].mxu0 }
 0x13b   : > { %305 = vst.msk [vmem:[%s217_s9] sm:$0xff] %vm304_vm2, %v301_v11 }
 0x13c   : > { %599 = shalt.err (!%p596_p5)
}
 0x13d   : > { %s600_s21 = scalar_lea.hbm %s870_s29, 128  ;;  %s604_s27 = scalar_lea.hbm %s922_s3, 256 }
 0x13e   : > { %p601_p9 = scmp.ne.s32.totalorder %s870_s29, %s600_s21  ;;  %p605_p7 = scmp.lt.u32.totalorder %s870_s29, %s922_s3 }
 0x13f   : > { %p606_p3 = scmp.lt.u32.totalorder %s604_s27, %s600_s21  ;;  %p608_p13 = scmp.lt.u32.totalorder %s600_s21, %s870_s29 }
 0x140   : > { %p602_p1 = pnand %p601_p9, %p798_p10 }
 0x141   : > { %p607_p4 = por %p606_p3, %p605_p7 }
 0x142   : > { %p603_p2 = pneg %p602_p1 }
 0x143   : > { %p609_p6 = por %p608_p13, %p607_p4 }
 0x145   : > { %p610_p8 = pnand %p609_p6, %p603_p2 }
 0x147   : > { %613 = shalt.err (!%p610_p8)
}
 0x148   : > { %456 = dma.vmem_to_hbm [thread:$0]  (%p798_p10), %s872_s10, 128, %s870_s29, %s307_s6  }
 0x149 PF: > { %s333_s22 = sand.u32 1, %s652_s12   ;;  %p940_p12 = scmp.ne.s32.totalorder %s930_s23, 0 }
 0x14a   : > { %p941_p11 = scmp.ge.s32.totalorder %s672_s17, 2  ;;  %s334_s24 = scalar_lea.sflag [#allocation4], %s333_s22 }
 0x14c   : > { %p467_p0 = pnand %p941_p11, %p940_p12 }
 0x14e   : > { %647 = dma.done.wait (!%p467_p0), %s334_s24, 128  }
 0x14f   : > { %649 = vsyncadd (!%p467_p0), %s334_s24, 4294967168  ;;  %s20_s17 = sadd.s32 1, %s672_s17   ;;  %s942_s12 = smov %s656_s13 }
 0x150   : > { %p17_p5 = scmp.ge.s32.totalorder %s20_s17, 4   ;;  %s943_s13 = smov %s660_s14 }
 0x151   : > { %s944_s14 = smov %s807_s5  ;;  %s945_s15 = smov %s668_s16 }
 0x152   : > { %s946_s16 = smov %s948_s28  ;;  %19 = sbr.rel (!%p17_p5) target bundleno = 7 (0x7), region = 81 }
 0x159   :  { %339 = vsyncpa [#allocation3], 1 }
 0x15a   :  { %341 = vsyncpa [#allocation3 + $0x1], 1 }
 0x15b   :  { %342 = vsyncpa [#allocation6], 1 }
 0x15c   :  { %343 = vsyncpa [#allocation4], 1 }
 0x15d   :  { %345 = vsyncpa [#allocation4 + $0x1], 1 }

</bundles_post_ra>
